<compile_context>
chip_gen: v7x
topology: tpu7x:2x2x1
jax: 0.10.0
libtpu: 0.0.40
codegen_flags: <defaults>
</compile_context>

<pallas_src>
import functools

import jax
import jax.numpy as jnp
from jax.experimental import pallas as pl
from jax.experimental.pallas import tpu as pltpu


# ----------------------------------------------------------------------------
# Kernels
# ----------------------------------------------------------------------------
def _se_fused_kernel(x_ref, w1_ref, w2_ref, o_ref, *, inv_hw):
    # x_ref / o_ref: (1, C, HW) block for the current batch element.
    x = x_ref[0].astype(jnp.float32)                        # (C, HW)

    # --- squeeze: global average pool (f32 accumulation) ----------------------
    pooled = jnp.sum(x, axis=-1, keepdims=True) * inv_hw    # (C, 1)

    # --- excitation: FC -> ReLU -> FC -> sigmoid -------------------------------
    # M=1 matmuls are done as broadcast-multiply + reduce (VPU/XLU) instead of
    # MXU fill/drain round trips; FLOPs here are negligible either way.
    w1 = w1_ref[...].astype(jnp.float32)                    # (C, hidden)
    w2 = w2_ref[...].astype(jnp.float32)                    # (C, hidden)
    h = jnp.maximum(jnp.sum(pooled * w1, axis=0, keepdims=True), 0.0)  # (1, hidden)
    logits = jnp.sum(h * w2, axis=-1, keepdims=True)        # (C, 1)
    gate = jax.nn.sigmoid(logits)                           # (C, 1) f32

    # --- scale: multiply in f32, single rounding to the output dtype ----------
    o_ref[0] = (x * gate).astype(o_ref.dtype)


def _se_pool_kernel(x_ref, psum_ref, *, hw, t_hw, need_mask):
    # x_ref: (1, C, t_hw) tile; psum_ref: (1, 1, C, 1) per-tile partial sum.
    xs = x_ref[0].astype(jnp.float32)                       # (C, t_hw)
    if need_mask:
        # Ragged final tile: out-of-bounds lanes hold stale VMEM data; mask
        # them to zero (compare+select on the VPU is free for a HBM-bound op).
        t = pl.program_id(1)
        lane = jax.lax.broadcasted_iota(jnp.int32, (1, t_hw), 1)
        xs = jnp.where(t * t_hw + lane < hw, xs, 0.0)
    psum_ref[0, 0] = jnp.sum(xs, axis=-1, keepdims=True)    # (C, 1)


def _se_scale_kernel(x_ref, sum_ref, w1_ref, w2_ref, o_ref, *, inv_hw):
    # x_ref / o_ref: (1, C, t_hw); sum_ref: (1, C, 1) f32 per-batch spatial sums.
    # The tiny excitation MLP is recomputed per tile (a few thousand VPU/EUP
    # ops, fully hidden under the tile DMA) so no XLA dots run between passes.
    pooled = sum_ref[0] * inv_hw                            # (C, 1)
    w1 = w1_ref[...].astype(jnp.float32)
    w2 = w2_ref[...].astype(jnp.float32)
    h = jnp.maximum(jnp.sum(pooled * w1, axis=0, keepdims=True), 0.0)  # (1, hidden)
    logits = jnp.sum(h * w2, axis=-1, keepdims=True)        # (C, 1)
    gate = jax.nn.sigmoid(logits)                           # (C, 1) f32
    # Out-of-bounds columns of a ragged final tile are dropped by the bounded
    # output DMA, so no masking is needed on the store side.
    o_ref[0] = (x_ref[0].astype(jnp.float32) * gate).astype(o_ref.dtype)


# ----------------------------------------------------------------------------
# Wrappers
# ----------------------------------------------------------------------------
def _round_up(n, m):
    return ((n + m - 1) // m) * m


def _default_vmem_budget_bytes():
    # Size decisions off real per-core VMEM when queryable; otherwise derive
    # the capacity from the device generation (v7x: 64 MiB per TensorCore,
    # v5e/v6e and earlier: 128 MiB) and keep 25% headroom.
    cap = 0
    try:
        cap = int(pltpu.get_tpu_info().vmem_capacity_bytes)
    except Exception:
        cap = 0
    if cap <= 0:
        kind = ""
        try:
            kind = jax.devices()[0].device_kind.lower()
        except Exception:
            pass
        cap = (64 << 20) if "v7" in kind else (128 << 20)
    return (cap * 3) // 4


def _probably_multi_tensorcore():
    # v7x exposes 2 TensorCores per chip; v5e/v6e have a single TC.
    try:
        return "v7" in jax.devices()[0].device_kind.lower()
    except Exception:
        return False


def _se_fused(x, w1_cr, w2_cr, vmem_limit_bytes, donate_input):
    B, C, H, W = x.shape
    HW = H * W
    hidden = w1_cr.shape[1]

    xf = x.reshape(B, C, HW)   # free reshape; no HBM-side padding or slicing

    kernel = functools.partial(_se_fused_kernel, inv_hw=1.0 / HW)
    out = pl.pallas_call(
        kernel,
        out_shape=jax.ShapeDtypeStruct((B, C, HW), x.dtype),
        grid_spec=pltpu.PrefetchScalarGridSpec(
            num_scalar_prefetch=0,
            grid=(B,),
            in_specs=[
                pl.BlockSpec((1, C, HW), lambda b: (b, 0, 0)),
                pl.BlockSpec((C, hidden), lambda b: (0, 0)),
                pl.BlockSpec((C, hidden), lambda b: (0, 0)),
            ],
            out_specs=pl.BlockSpec((1, C, HW), lambda b: (b, 0, 0)),
        ),
        compiler_params=pltpu.CompilerParams(
            dimension_semantics=("parallel",),
            vmem_limit_bytes=int(vmem_limit_bytes),
        ),
        input_output_aliases=({0: 0} if donate_input else {}),
    )(xf, w1_cr, w2_cr)

    return out.reshape(B, C, H, W)


def _se_two_pass(x, w1_cr, w2_cr, vmem_budget_bytes, donate_input):
    B, C, H, W = x.shape
    HW = H * W
    hidden = w1_cr.shape[1]
    itemsize = jnp.dtype(x.dtype).itemsize

    # Spatial tile: largest multiple of 128 whose ~5 live (1, C, t_hw) slabs
    # (2 in + 2 out double buffers + one transient; plus f32 transients for
    # sub-32-bit inputs) fit the budget, with a floor so each strided DMA row
    # is >= 2 KiB (short rows cannot sustain HBM bandwidth).
    per_lane = C * (5 * itemsize + (8 if itemsize < 4 else 0))
    max_t = (vmem_budget_bytes // max(per_lane, 1)) // 128 * 128
    lane_floor = 512 if itemsize >= 4 else 1024
    t_hw = min(max(max_t, lane_floor), _round_up(HW, 128))
    t_hw = max(t_hw, 128)
    # For B == 1, split the spatial axis into at least two tiles so megacore
    # (v7x) has independent parallel work.
    if B == 1 and HW >= 2 * lane_floor:
        t_hw = min(t_hw, _round_up(pl.cdiv(HW, 2), 128))
    n_t = pl.cdiv(HW, t_hw)
    need_mask = (HW % t_hw) != 0

    xf = x.reshape(B, C, HW)   # no padding; ragged final tile is masked/bounded

    # ---- pass (a): per-tile partial spatial sums (fully parallel grid) -------
    pool = functools.partial(_se_pool_kernel, hw=HW, t_hw=t_hw, need_mask=need_mask)
    partials = pl.pallas_call(
        pool,
        out_shape=jax.ShapeDtypeStruct((B, n_t, C, 1), jnp.float32),
        grid_spec=pltpu.PrefetchScalarGridSpec(
            num_scalar_prefetch=0,
            grid=(B, n_t),
            in_specs=[pl.BlockSpec((1, C, t_hw), lambda b, t: (b, 0, t))],
            out_specs=pl.BlockSpec((1, 1, C, 1), lambda b, t: (b, t, 0, 0)),
        ),
        compiler_params=pltpu.CompilerParams(
            dimension_semantics=("parallel", "parallel"),
            vmem_limit_bytes=int(vmem_budget_bytes),
        ),
    )(xf)

    # Tiny reduction over the spatial tiles; everything else (MLP + sigmoid)
    # is folded into the scale kernel below.
    sums = jnp.sum(partials, axis=1)                        # (B, C, 1) f32

    # ---- pass (b)+(c): excitation MLP fused into the channel re-scaling ------
    scale = functools.partial(_se_scale_kernel, inv_hw=1.0 / HW)
    out = pl.pallas_call(
        scale,
        out_shape=jax.ShapeDtypeStruct((B, C, HW), x.dtype),
        grid_spec=pltpu.PrefetchScalarGridSpec(
            num_scalar_prefetch=0,
            grid=(B, n_t),
            in_specs=[
                pl.BlockSpec((1, C, t_hw), lambda b, t: (b, 0, t)),
                pl.BlockSpec((1, C, 1), lambda b, t: (b, 0, 0)),
                pl.BlockSpec((C, hidden), lambda b, t: (0, 0)),
                pl.BlockSpec((C, hidden), lambda b, t: (0, 0)),
            ],
            out_specs=pl.BlockSpec((1, C, t_hw), lambda b, t: (b, 0, t)),
        ),
        compiler_params=pltpu.CompilerParams(
            dimension_semantics=("parallel", "parallel"),
            vmem_limit_bytes=int(vmem_budget_bytes),
        ),
        input_output_aliases=({0: 0} if donate_input else {}),
    )(xf, sums, w1_cr, w2_cr)

    return out.reshape(B, C, H, W)


def se_layer(x_nchw, w1_cr, w2_cr, *, vmem_budget_bytes=None,
             force_two_pass=False, donate_input=False):
    """SELayer forward.

    x_nchw : (B, C, H, W)
    w1_cr  : (C, C//r) == W1.T where W1 = nn.Linear(C, C//r, bias=False).weight
    w2_cr  : (C, C//r) == W2   where W2 = nn.Linear(C//r, C, bias=False).weight
    donate_input : add input_output_aliases={0: 0} so the result reuses x's
        HBM buffer (effective when x is donated / an intermediate under jit;
        otherwise XLA inserts a defensive copy).
    """
    B, C, H, W = x_nchw.shape
    HW = H * W
    itemsize = jnp.dtype(x_nchw.dtype).itemsize
    if vmem_budget_bytes is None:
        vmem_budget_bytes = _default_vmem_budget_bytes()
    vmem_budget_bytes = int(vmem_budget_bytes)

    # Fused-path live-VMEM estimate: double-buffered input + output (1, C, HW)
    # blocks, the small weight blocks and slack.  Only sub-32-bit inputs pay
    # for the transient f32 cast/product slabs of the f32 scale; the f32
    # reduce itself does not materialize an extra full slab.
    w_bytes = 4 * C * w1_cr.shape[1] * jnp.dtype(w1_cr.dtype).itemsize
    fused_bytes = 4 * C * HW * itemsize + w_bytes + (1 << 20)
    if itemsize < 4:
        fused_bytes += 2 * C * HW * 4

    # On multi-TensorCore chips (v7x) a single batch element leaves half the
    # chip idle on the fused path; the fully parallel two-pass path (1.5x HBM
    # traffic split across 2 TCs ~ 0.75x per core) wins for large maps.
    prefer_two_pass = (B == 1 and HW >= 4096 and _probably_multi_tensorcore())

    if force_two_pass or prefer_two_pass or fused_bytes > vmem_budget_bytes:
        return _se_two_pass(x_nchw, w1_cr, w2_cr, vmem_budget_bytes, donate_input)
    return _se_fused(x_nchw, w1_cr, w2_cr, vmem_budget_bytes, donate_input)


# ----------------------------------------------------------------------------
# Self-test
# ----------------------------------------------------------------------------
if __name__ == "__main__":
    key = jax.random.PRNGKey(0)

    def reference(x, w1_cr, w2_cr):
        xf = x.astype(jnp.float32)
        pooled = jnp.mean(xf, axis=(2, 3))                             # (B, C)
        h = jnp.maximum(pooled @ w1_cr.astype(jnp.float32), 0.0)       # (B, hid)
        gates = jax.nn.sigmoid(h @ w2_cr.astype(jnp.float32).T)        # (B, C)
        return (xf * gates[:, :, None, None]).astype(x.dtype)

    # Case 1: f32, C=64, reduction=16, 16x16 feature map (HW multiple of 128).
    B, C, H, W, red = 2, 64, 16, 16, 16
    hidden = C // red
    k1, k2, k3, key = jax.random.split(key, 4)
    x = jax.random.normal(k1, (B, C, H, W), dtype=jnp.float32)
    w1_cr = 0.1 * jax.random.normal(k2, (C, hidden), dtype=jnp.float32)   # = W1.T
    w2_cr = 0.1 * jax.random.normal(k3, (C, hidden), dtype=jnp.float32)   # = W2
    ref = reference(x, w1_cr, w2_cr)

    out_fused = se_layer(x, w1_cr, w2_cr)
    jax.block_until_ready(out_fused)
    assert jnp.allclose(out_fused, ref, atol=1e-5, rtol=1e-5), "fused path mismatch"

    out_split = se_layer(x, w1_cr, w2_cr, force_two_pass=True)
    jax.block_until_ready(out_split)
    assert jnp.allclose(out_split, ref, atol=1e-5, rtol=1e-5), "two-pass path mismatch"

    # Case 2: f32, non-128-aligned spatial size (exercises ragged-lane blocks).
    B2, C2, H2, W2, red2 = 2, 32, 10, 10, 16
    hidden2 = C2 // red2
    k1, k2, k3, key = jax.random.split(key, 4)
    x2 = jax.random.normal(k1, (B2, C2, H2, W2), dtype=jnp.float32)
    w1b = 0.1 * jax.random.normal(k2, (C2, hidden2), dtype=jnp.float32)
    w2b = 0.1 * jax.random.normal(k3, (C2, hidden2), dtype=jnp.float32)
    ref2 = reference(x2, w1b, w2b)

    out2 = se_layer(x2, w1b, w2b)
    jax.block_until_ready(out2)
    assert jnp.allclose(out2, ref2, atol=1e-5, rtol=1e-5), "fused ragged path mismatch"

    out2s = se_layer(x2, w1b, w2b, force_two_pass=True)
    jax.block_until_ready(out2s)
    assert jnp.allclose(out2s, ref2, atol=1e-5, rtol=1e-5), "two-pass ragged path mismatch"

    # Case 3: bf16 input/weights, non-128-aligned (exercises f32-scale + cast).
    B3, C3, H3, W3, red3 = 2, 32, 12, 12, 8
    hidden3 = C3 // red3
    k1, k2, k3, key = jax.random.split(key, 4)
    x3 = jax.random.normal(k1, (B3, C3, H3, W3), dtype=jnp.float32).astype(jnp.bfloat16)
    w1c = (0.1 * jax.random.normal(k2, (C3, hidden3), dtype=jnp.float32)).astype(jnp.bfloat16)
    w2c = (0.1 * jax.random.normal(k3, (C3, hidden3), dtype=jnp.float32)).astype(jnp.bfloat16)
    ref3 = reference(x3, w1c, w2c).astype(jnp.float32)

    out3 = se_layer(x3, w1c, w2c)
    jax.block_until_ready(out3)
    assert jnp.allclose(out3.astype(jnp.float32), ref3, atol=2e-2, rtol=2e-2), \
        "fused bf16 path mismatch"

    out3s = se_layer(x3, w1c, w2c, force_two_pass=True)
    jax.block_until_ready(out3s)
    assert jnp.allclose(out3s.astype(jnp.float32), ref3, atol=2e-2, rtol=2e-2), \
        "two-pass bf16 path mismatch"

    print("KERNEL_OK")
</pallas_src>

<mosaic_0001>
module attributes {stable_mosaic.version = 11 : i64} {
  func.func @_se_fused_kernel(%arg0: i32, %arg1: memref<1x64x256xf32, #tpu.memory_space<vmem>>, %arg2: memref<64x4xf32, #tpu.memory_space<vmem>>, %arg3: memref<64x4xf32, #tpu.memory_space<vmem>>, %arg4: memref<1x64x256xf32, #tpu.memory_space<vmem>>) attributes {dimension_semantics = [#tpu.dimension_semantics<parallel>], iteration_bounds = array<i64: 2>, scalar_prefetch = 0 : i64, scratch_operands = 0 : i64, tpu.core_type = #tpu.core_type<tc>, window_params = [{transform_indices = @transform_0, window_bounds = array<i64: 1, 64, 256>}, {pipeline_mode = #tpu.pipeline_mode<synchronous>, transform_indices = @transform_1, window_bounds = array<i64: 64, 4>}, {pipeline_mode = #tpu.pipeline_mode<synchronous>, transform_indices = @transform_2, window_bounds = array<i64: 64, 4>}, {transform_indices = @transform_3, window_bounds = array<i64: 1, 64, 256>}]} {
    %c0 = arith.constant 0 : index
    %c0_0 = arith.constant 0 : index
    %c0_1 = arith.constant 0 : index
    %0 = vector.load %arg1[%c0, %c0_0, %c0_1] : memref<1x64x256xf32, #tpu.memory_space<vmem>>, vector<1x64x256xf32>
    %1 = vector.shape_cast %0 : vector<1x64x256xf32> to vector<64x256xf32>
    %cst = arith.constant dense<0.000000e+00> : vector<64xf32>
    %2 = vector.multi_reduction <add>, %1, %cst [1] : vector<64x256xf32> to vector<64xf32>
    %3 = vector.shape_cast %2 : vector<64xf32> to vector<64x1xf32>
    %cst_2 = arith.constant 3.906250e-03 : f32
    %4 = vector.broadcast %cst_2 : f32 to vector<64x1xf32>
    %5 = arith.mulf %3, %4 : vector<64x1xf32>
    %c0_3 = arith.constant 0 : index
    %c0_4 = arith.constant 0 : index
    %6 = vector.load %arg2[%c0_3, %c0_4] : memref<64x4xf32, #tpu.memory_space<vmem>>, vector<64x4xf32>
    %c0_5 = arith.constant 0 : index
    %c0_6 = arith.constant 0 : index
    %7 = vector.load %arg3[%c0_5, %c0_6] : memref<64x4xf32, #tpu.memory_space<vmem>>, vector<64x4xf32>
    %8 = vector.broadcast %5 : vector<64x1xf32> to vector<64x4xf32>
    %9 = arith.mulf %8, %6 : vector<64x4xf32>
    %cst_7 = arith.constant dense<0.000000e+00> : vector<4xf32>
    %10 = vector.multi_reduction <add>, %9, %cst_7 [0] : vector<64x4xf32> to vector<4xf32>
    %11 = vector.shape_cast %10 : vector<4xf32> to vector<1x4xf32>
    %cst_8 = arith.constant 0.000000e+00 : f32
    %12 = vector.broadcast %cst_8 : f32 to vector<1x4xf32>
    %13 = arith.maximumf %11, %12 : vector<1x4xf32>
    %14 = vector.broadcast %13 : vector<1x4xf32> to vector<64x4xf32>
    %15 = arith.mulf %14, %7 : vector<64x4xf32>
    %cst_9 = arith.constant dense<0.000000e+00> : vector<64xf32>
    %16 = vector.multi_reduction <add>, %15, %cst_9 [1] : vector<64x4xf32> to vector<64xf32>
    %17 = vector.shape_cast %16 : vector<64xf32> to vector<64x1xf32>
    %18 = arith.negf %17 : vector<64x1xf32>
    %19 = math.exp %18 : vector<64x1xf32>
    %cst_10 = arith.constant 1.000000e+00 : f32
    %20 = vector.broadcast %cst_10 : f32 to vector<64x1xf32>
    %21 = arith.addf %20, %19 : vector<64x1xf32>
    %22 = arith.divf %20, %21 : vector<64x1xf32>
    %23 = vector.broadcast %22 : vector<64x1xf32> to vector<64x256xf32>
    %24 = arith.mulf %1, %23 : vector<64x256xf32>
    %c0_11 = arith.constant 0 : index
    %c0_12 = arith.constant 0 : index
    %c0_13 = arith.constant 0 : index
    %25 = vector.load %arg4[%c0_11, %c0_12, %c0_13] : memref<1x64x256xf32, #tpu.memory_space<vmem>>, vector<1x64x256xf32>
    %26 = vector.shape_cast %25 : vector<1x64x256xf32> to vector<64x256xf32>
    %27 = vector.shape_cast %24 : vector<64x256xf32> to vector<1x64x256xf32>
    tpu.vector_store %arg4[%c0_11, %c0_12, %c0_13], %27 {strides = array<i32>} : memref<1x64x256xf32, #tpu.memory_space<vmem>>, vector<1x64x256xf32>,
    return
  }
  func.func @transform_0(%arg0: i32) -> (i32, i32, i32) {
    %c0_i32 = arith.constant 0 : i32
    %c0_i32_0 = arith.constant 0 : i32
    %c0_i32_1 = arith.constant 0 : i32
    return %arg0, %c0_i32, %c0_i32_0 : i32, i32, i32
  }
  func.func @transform_1(%arg0: i32) -> (i32, i32) {
    %c0_i32 = arith.constant 0 : i32
    %c0_i32_0 = arith.constant 0 : i32
    %c0_i32_1 = arith.constant 0 : i32
    return %c0_i32, %c0_i32_0 : i32, i32
  }
  func.func @transform_2(%arg0: i32) -> (i32, i32) {
    %c0_i32 = arith.constant 0 : i32
    %c0_i32_0 = arith.constant 0 : i32
    %c0_i32_1 = arith.constant 0 : i32
    return %c0_i32, %c0_i32_0 : i32, i32
  }
  func.func @transform_3(%arg0: i32) -> (i32, i32, i32) {
    %c0_i32 = arith.constant 0 : i32
    %c0_i32_0 = arith.constant 0 : i32
    %c0_i32_1 = arith.constant 0 : i32
    return %arg0, %c0_i32, %c0_i32_0 : i32, i32, i32
  }
}

</mosaic_0001>

<bundles_post_ra>
// kernel: tpu_custom_call.1
= control target key start
LH: loop header
LB: loop body
LE: loop exit
PB: predicated region body
PF: predicated region fallthrough
CT: control target
= control target key end

     0   :  { %8 = vsyncpa [#allocation3], 0  ;;  %s1189_s0 = inlined_call_operand.hbm [shape: f32[2,64,256], index: 0, kind: input, shape index: {}]   ;;  %s1190_s1 = inlined_call_operand.hbm [shape: f32[64,4], index: 1, kind: input, shape index: {}]   ;;  %s1191_s2 = inlined_call_operand.hbm [shape: f32[64,4], index: 2, kind: input, shape index: {}]   ;;  %s1192_s3 = inlined_call_operand.hbm [shape: f32[2,64,256], index: 3, kind: output, shape index: {}]  }
   0x1   :  { %10 = vsyncpa [#allocation3 + $0x1], 0 }
   0x2   :  { %11 = vsyncpa [#allocation6], 0 }
   0x3   :  { %12 = vsyncpa [#allocation4], 0 }
   0x4   :  { %14 = vsyncpa [#allocation4 + $0x1], 0  ;;  %s852_s12 = smov 0   ;;  %s854_s13 = smov 0  }
   0x5   :  { %s856_s14 = smov 0   ;;  %s858_s15 = smov 0  }
   0x6 LB: > { %s873_s16 = sadd.s32 4294967295, %s820_s15   ;;  %s531_s17 = sadd.s32 4294967294, %s820_s15   ;;  %s820_s15 = sphi %s858_s15, %s1212_s15   ;;  %s816_s14 = sphi %s856_s14, %s1211_s14   ;;  %s812_s13 = sphi %s854_s13, %s1210_s13   ;;  %s808_s12 = sphi %s852_s12, %s1209_s12  }
   0x7   : > { %p40_p0 = scmp.ne.s32.totalorder %s812_s13, %s808_s12  ;;  %p1193_p1 = scmp.eq.s32.totalorder %s873_s16, 0 }
   0x8   : > { %p112_p3 = scmp.eq.s32.totalorder %s531_s17, 1  ;;  %p532_p5 = scmp.ge.s32.totalorder %s820_s15, 1 }
   0x9   : > { %p882_p4 = por %p1193_p1, %p40_p0  ;;  %p119_p7 = scmp.lt.s32.totalorder %s820_s15, 3 }
   0xa   : > { %p887_p6 = por %p112_p3, %p40_p0  ;;  %s822_s21 = smov [#allocation5]  }
   0xb   : > { %s1196_s18 = scalar_select %p882_p4, 1, 0 }
   0xc   : > { %s1197_s19 = scalar_select %p887_p6, 1, 0 }
   0xd   : > { %p892_p8 = pnand %p532_p5, %p119_p7  ;;  %s131_s22 = sshll.u32 %s822_s21, 4  ;;  %s896_s22 = int_to_ptr.vmem [resolvable:$true] %s131_s22 }
   0xe   : > { %s823_s24 = smov [#allocation7]   ;;  %s664_s28 = scalar_lea.hbm %s1190_s1, 1024 }
   0xf   : > { %p571_p9 = pneg %p892_p8  ;;  %s144_s25 = sshll.u32 %s823_s24, 4  ;;  %s907_s25 = int_to_ptr.vmem [resolvable:$true] %s144_s25 }
  0x10   : > { %p665_p12 = scmp.ne.s32.totalorder %s1190_s1, %s664_s28  ;;  %p671_p5 = scmp.lt.u32.totalorder %s664_s28, %s1190_s1 }
  0x11   : > { %p903_p11 = pnand %p571_p9, %p1193_p1 }
  0x13   : > { %p666_p13 = pneg %p903_p11 }
  0x15   : > { %p667_p0 = pnand %p666_p13, %p665_p12 }
  0x17   : > { %p668_p3 = pneg %p667_p0 }
  0x19   : > { %p673_p7 = pnand %p671_p5, %p668_p3 }
  0x1b   : > { %676 = shalt.err (!%p673_p7)
}
  0x1c   : > { %s677_s6 = scalar_lea.vmem %s896_s22, 1024  ;;  %p685_p2 = scmp.lt.s32.totalorder %s896_s22, %s896_s22 }
  0x1d   : > { %p678_p9 = scmp.ne.s32.totalorder %s896_s22, %s677_s6  ;;  %p686_p12 = scmp.lt.s32.totalorder %s677_s6, %s677_s6 }
  0x1f   : > { %p680_p10 = pnand %p678_p9, %p666_p13  ;;  %p687_p0 = por %p686_p12, %p685_p2 }
  0x21   : > { %p681_p1 = pneg %p680_p10 }
  0x23   : > { %p688_p6 = pnand %p687_p0, %p681_p1 }
  0x25   : > { %691 = shalt.err (!%p688_p6)
}
  0x26   : > { %s824_s7 = smov 128   ;;  %s825_s8 = smov 8  }
  0x27   : > { %574 = dma.hbm_to_vmem [thread:$0]  (!%p903_p11), %s1190_s1, 1024, %s896_s22, [#allocation6], %s824_s7, %s824_s7, %s825_s8  }
  0x28   : > { %s692_s21 = scalar_lea.hbm %s1191_s2, 1024 }
  0x29   : > { %p693_p2 = scmp.ne.s32.totalorder %s1191_s2, %s692_s21  ;;  %p699_p10 = scmp.lt.u32.totalorder %s692_s21, %s1191_s2 }
  0x2b   : > { %p695_p1 = pnand %p693_p2, %p666_p13 }
  0x2d   : > { %p696_p6 = pneg %p695_p1 }
  0x2f   : > { %p701_p3 = pnand %p699_p10, %p696_p6 }
  0x31   : > { %704 = shalt.err (!%p701_p3)
}
  0x32   : > { %s705_s22 = scalar_lea.vmem %s907_s25, 1024  ;;  %p713_p12 = scmp.lt.s32.totalorder %s907_s25, %s907_s25 }
  0x33   : > { %p706_p5 = scmp.ne.s32.totalorder %s907_s25, %s705_s22  ;;  %p714_p0 = scmp.lt.s32.totalorder %s705_s22, %s705_s22 }
  0x35   : > { %p708_p7 = pnand %p706_p5, %p666_p13  ;;  %p715_p2 = por %p714_p0, %p713_p12 }
  0x37   : > { %p709_p9 = pneg %p708_p7 }
  0x39   : > { %p716_p1 = pnand %p715_p2, %p709_p9 }
  0x3b   : > { %719 = shalt.err (!%p716_p1)
}
  0x3c   : > { %577 = dma.hbm_to_vmem [thread:$0]  (!%p903_p11), %s1191_s2, 1024, %s907_s25, [#allocation6], %s824_s7, %s824_s7, %s825_s8  }
  0x3d   : > { %s962_s4 = sadd.s32 1, %s820_s15   ;;  %s27_s23 = sadd.s32 1, %s816_s14 }
  0x3e   : > { %s24_s5 = ssub.s32 %s820_s15, %s962_s4  ;;  %p34_p13 = scmp.ne.s32.totalorder %s816_s14, %s812_s13 }
  0x3f   : > { %p25_p6 = scmp.eq.s32.totalorder %s24_s5, 0  ;;  %p35_p10 = scmp.eq.s32.totalorder %s820_s15, 0 }
  0x40   : > { %p1200_p3 = scmp.eq.s32.totalorder %s873_s16, 1  ;;  %p588_p7 = scmp.lt.s32.totalorder %s820_s15, 2 }
  0x41   : > { %s978_s9 = scalar_select %p25_p6, %s816_s14, %s27_s23  }
  0x42   : > { %p972_p5 = por %p1200_p3, %p34_p13  ;;  %p36_p9 = por %p35_p10, %p34_p13 }
  0x43   : > { %s158_s10 = sand.u32 1, %s816_s14   ;;  %s557_s25 = sshll.u32 %s820_s15, 11 }
  0x44   : > { %s1201_s6 = scalar_select %p972_p5, 1, 0 }
  0x45   : > { %s536_s11 = sshll.u32 %s158_s10, 7  ;;  %s985_s17 = scalar_lea.hbm %s1189_s0, %s557_s25 }
  0x46   : > { %s162_s21 = scalar_lea.vmem [#allocation2], %s536_s11  ;;  %p989_p11 = pnand %p588_p7, %p36_p9 }
  0x47   : > { %s169_s24 = sshll.u32 %s162_s21, 4  ;;  %s993_s27 = scalar_lea.sflag [#allocation3], %s158_s10  ;;  %s987_s24 = int_to_ptr.vmem [resolvable:$true] %s169_s24 }
  0x48   : > { %s720_s28 = scalar_lea.hbm %s985_s17, 2048  ;;  %p722_p0 = pneg %p989_p11 }
  0x49   : > { %p721_p12 = scmp.ne.s32.totalorder %s985_s17, %s720_s28  ;;  %s725_s30 = scalar_lea.hbm %s1189_s0, 4096 }
  0x4a   : > { %p726_p13 = scmp.lt.u32.totalorder %s985_s17, %s1189_s0  ;;  %p727_p6 = scmp.lt.u32.totalorder %s725_s30, %s720_s28 }
  0x4b   : > { %p723_p2 = pnand %p722_p0, %p721_p12  ;;  %p729_p3 = scmp.lt.u32.totalorder %s720_s28, %s985_s17 }
  0x4c   : > { %p728_p10 = por %p727_p6, %p726_p13 }
  0x4d   : > { %p724_p1 = pneg %p723_p2 }
  0x4e   : > { %p730_p7 = por %p729_p3, %p728_p10 }
  0x50   : > { %p731_p9 = pnand %p730_p7, %p724_p1 }
  0x52   : > { %734 = shalt.err (!%p731_p9)
}
  0x53   : > { %s735_s10 = scalar_lea.vmem %s987_s24, 2048  ;;  %s826_s11 = smov [#allocation2]  }
  0x54   : > { %p736_p12 = scmp.ne.s32.totalorder %s987_s24, %s735_s10  ;;  %s740_s25 = sshll.u32 %s826_s11, 4  ;;  %s741_s25 = int_to_ptr.vmem [resolvable:$false] %s740_s25 }
  0x55   : > { %s742_s7 = scalar_lea.vmem %s741_s25, 4096  ;;  %p743_p4 = scmp.lt.s32.totalorder %s987_s24, %s741_s25 }
  0x56   : > { %p738_p2 = pnand %p736_p12, %p722_p0  ;;  %p744_p13 = scmp.lt.s32.totalorder %s742_s7, %s735_s10 }
  0x58   : > { %p739_p5 = pneg %p738_p2  ;;  %p745_p6 = por %p744_p13, %p743_p4 }
  0x5a   : > { %p746_p10 = pnand %p745_p6, %p739_p5 }
  0x5c   : > { %749 = shalt.err (!%p746_p10)
}
  0x5d   : > { %s827_s8 = smov 256   ;;  %s828_s21 = smov 16  }
  0x5e   : > { %581 = dma.hbm_to_vmem [thread:$0]  (!%p989_p11), %s985_s17, 2048, %s987_s24, %s993_s27, %s827_s8, %s827_s8, %s828_s21  }
  0x5f   : > { %181 = sbr.rel (%p892_p8) target bundleno = 491 (0x1eb), region = 32  ;;  %s1024_s28 = sand.u32 (!%p892_p8), 1, %s812_s13  }
  0x60   : > { %s540_s22 = sshll.u32 (!%p892_p8), %s1024_s28, 7  ;;  %s184_s29 = scalar_lea.sflag (!%p892_p8), [#allocation3], %s1024_s28 }
  0x61   : > { %s187_s30 = scalar_lea.vmem (!%p892_p8), [#allocation2], %s540_s22  ;;  %p1203_p4 = scmp.ne.s32.totalorder (!%p892_p8), %s1196_s18, 0 }
  0x66   : > { %795 = dma.done.wait (%p1203_p4), %s184_s29, 2048  }
  0x67   : > { %797 = vsyncadd (%p1203_p4), %s184_s29, 4294965248  ;;  %p1204_p5 = scmp.eq.s32.totalorder %s873_s16, 0 }
  0x69   : > { %799 = dma.done.wait (%p1204_p5), [#allocation6], 2048   ;;  %p1205_p8 = pmov %p1204_p5 }
  0x6a   : > { %v1038_v0 = vld [vmem:[%s187_s30] sm:$0xff]  ;;  %v1040_v1 = vld [vmem:[%s187_s30 + $0x8] sm:$0xff]  ;;  %v1048_v5 = vld [vmem:[%s187_s30 + $0x10] sm:$0xff]  ;;  %vm290_vm0 = vcmask 31744   ;;  %s1108_s18 = scalar_lea.vmem [#allocation8], %s540_s22  ;;  %s558_s20 = sshll.u32 %s873_s16, 11 }
  0x6b   : > { %801 = vsyncadd (%p1205_p8), [#allocation6], 4294965248  ;;  %v1042_v2 = vld [vmem:[%s187_s30 + $0x20] sm:$0xff]  ;;  %v234_v3 = vadd.f32 %v1040_v1, %v1038_v0  ;;  %v1046_v4 = vld [vmem:[%s187_s30 + $0x28] sm:$0xff]  ;;  %s439_s17 = sshll.u32 %s1108_s18, 4  ;;  %s1139_s27 = scalar_lea.hbm %s1192_s3, %s558_s20  ;;  %s1141_s17 = int_to_ptr.vmem [resolvable:$true] %s439_s17 }
  0x6c   : > { %v1050_v6 = vld [vmem:[%s187_s30 + $0x18] sm:$0xff]  ;;  %v240_v7 = vadd.f32 %v1046_v4, %v1042_v2  ;;  %v1054_v8 = vld [vmem:[%s187_s30 + $0x30] sm:$0xff]  ;;  %v1062_v12 = vld [vmem:[%s187_s30 + $0x40] sm:$0xff]  ;;  %s426_s16 = scalar_lea.sflag [#allocation4], %s1024_s28  ;;  %s750_s23 = scalar_lea.vmem %s1141_s17, 2048 }
  0x6d   : > { %v1056_v9 = vld [vmem:[%s187_s30 + $0x38] sm:$0xff]  ;;  %235 = vadd.xlane.f32.xlu0 %v234_v3  ;;  %v237_v10 = vadd.f32 %v1050_v6, %v1048_v5  ;;  %v1064_v13 = vld [vmem:[%s187_s30 + $0x48] sm:$0xff]  ;;  %v1066_v14 = vld [vmem:[%s187_s30 + $0x50] sm:$0xff]  ;;  %p751_p11 = scmp.ne.s32.totalorder %s1141_s17, %s750_s23  ;;  %p1206_p0 = scmp.ne.s32.totalorder %s1201_s6, 0 }
  0x6e   : > { %241 = vadd.xlane.f32.xlu1 %v240_v7  ;;  %v243_v11 = vadd.f32 %v1056_v9, %v1054_v8  ;;  %v1068_v15 = vld [vmem:[%s187_s30 + $0x58] sm:$0xff]  ;;  %v246_v16 = vadd.f32 %v1064_v13, %v1062_v12  ;;  %v1074_v18 = vld [vmem:[%s187_s30 + $0x60] sm:$0xff]  ;;  %v1076_v19 = vld [vmem:[%s187_s30 + $0x68] sm:$0xff]  ;;  %s829_s5 = smov [#allocation8]  }
  0x6f   : > { %v249_v17 = vadd.f32 %v1068_v15, %v1066_v14  ;;  %v1078_v20 = vld [vmem:[%s187_s30 + $0x70] sm:$0xff]  ;;  %v1080_v21 = vld [vmem:[%s187_s30 + $0x78] sm:$0xff]  ;;  %v252_v22 = vadd.f32 %v1076_v19, %v1074_v18  ;;  %v266_v27 = vld [vmem:[#allocation5] sm:$0xff]  ;;  %p752_p1 = pnand %p751_p11, %p1206_p0  ;;  %s754_s10 = sshll.u32 %s829_s5, 4  ;;  %s755_s10 = int_to_ptr.vmem [resolvable:$false] %s754_s10 }
  0x70   : > { %v255_v23 = vadd.f32 %v1080_v21, %v1078_v20  ;;  %v268_v29 = vld [vmem:[#allocation5 + $0x10] sm:$0xff]  ;;  %v267_v30 = vld [vmem:[#allocation5 + $0x8] sm:$0xff]  ;;  %v269_v34 = vld [vmem:[#allocation5 + $0x18] sm:$0xff]  ;;  %s756_s11 = scalar_lea.vmem %s755_s10, 4096  ;;  %p757_p7 = scmp.lt.s32.totalorder %s1141_s17, %s755_s10 }
  0x71   : > { %238 = vadd.xlane.f32.xlu0 %v237_v10  ;;  %v270_v40 = vld [vmem:[#allocation5 + $0x20] sm:$0xff]  ;;  %v271_v45 = vld [vmem:[#allocation5 + $0x28] sm:$0xff]  ;;  %v272_v54 = vld [vmem:[#allocation5 + $0x30] sm:$0xff]  ;;  %p753_p3 = pneg %p752_p1  ;;  %p758_p9 = scmp.lt.s32.totalorder %s756_s11, %s750_s23 }
  0x72   : > { %244 = vadd.xlane.f32.xlu1 %v243_v11  ;;  %v273_v58 = vld [vmem:[#allocation5 + $0x38] sm:$0xff] }
  0x73   : > { %p759_p12 = por %p758_p9, %p757_p7 }
  0x75   : > { %247 = vadd.xlane.f32.xlu0 %v246_v16  ;;  %p760_p2 = pnand %p759_p12, %p753_p3 }
  0x76   : > { %250 = vadd.xlane.f32.xlu1 %v249_v17 }
  0x79   : > { %253 = vadd.xlane.f32.xlu0 %v252_v22 }
  0x7a   : > { %256 = vadd.xlane.f32.xlu1 %v255_v23 }
  0xfa   : > { %v236_v24 = vpop.xlane.xlu0 %235 }
  0xfb   : > { %v258_v25 = vmul.f32 0.00390625, %v236_v24  ;;  %v242_v26 = vpop.xlane.xlu1 %241 }
  0xfc   : > { %v260_v28 = vmul.f32 0.00390625, %v242_v26 }
  0xfd   : > { %v282_v32 = vmul.f32 %v266_v27, %v258_v25 }
  0xfe   : > { %v239_v31 = vpop.xlane.xlu0 %238  ;;  %v284_v37 = vmul.f32 %v268_v29, %v260_v28  ;;  %v275_v29 = vld [vmem:[#allocation7 + $0x8] sm:$0xff] }
  0xff   : > { %v259_v33 = vmul.f32 0.00390625, %v239_v31  ;;  %v245_v35 = vpop.xlane.xlu1 %244  ;;  %v291_v42 = vsel %vm290_vm0, %v282_v32, 0.0  ;;  %v277_v32 = vld [vmem:[#allocation7 + $0x18] sm:$0xff] }
 0x100   : > { %v261_v36 = vmul.f32 0.00390625, %v245_v35  ;;  %v294_v49 = vsel %vm290_vm0, %v284_v37, 0.0 }
 0x101   : > { %v283_v38 = vmul.f32 %v267_v30, %v259_v33  ;;  %v274_v30 = vld [vmem:[#allocation7] sm:$0xff]  ;;  %v276_v33 = vld [vmem:[#allocation7 + $0x10] sm:$0xff] }
 0x102   : > { %v285_v39 = vmul.f32 %v269_v34, %v261_v36  ;;  %v248_v41 = vpop.xlane.xlu0 %247 }
 0x103   : > { %v292_v43 = vsel %vm290_vm0, %v283_v38, 0.0  ;;  %v262_v44 = vmul.f32 0.00390625, %v248_v41  ;;  %v251_v46 = vpop.xlane.xlu1 %250  ;;  %v278_v41 = vld [vmem:[#allocation7 + $0x20] sm:$0xff] }
 0x104   : > { %v293_v47 = vadd.f32 %v292_v43, %v291_v42  ;;  %v263_v48 = vmul.f32 0.00390625, %v251_v46  ;;  %v296_v50 = vsel %vm290_vm0, %v285_v39, 0.0  ;;  %v281_v46 = vld [vmem:[#allocation7 + $0x38] sm:$0xff] }
 0x105   : > { %v286_v51 = vmul.f32 %v270_v40, %v262_v44  ;;  %v279_v40 = vld [vmem:[#allocation7 + $0x28] sm:$0xff] }
 0x106   : > { %v295_v52 = vadd.f32 %v294_v49, %v293_v47  ;;  %v287_v53 = vmul.f32 %v271_v45, %v263_v48  ;;  %v254_v55 = vpop.xlane.xlu0 %253  ;;  %v280_v47 = vld [vmem:[#allocation7 + $0x30] sm:$0xff] }
 0x107   : > { %v298_v56 = vsel %vm290_vm0, %v286_v51, 0.0  ;;  %v264_v57 = vmul.f32 0.00390625, %v254_v55  ;;  %v257_v59 = vpop.xlane.xlu1 %256 }
 0x108   : > { %v297_v60 = vadd.f32 %v296_v50, %v295_v52  ;;  %v265_v61 = vmul.f32 0.00390625, %v257_v59  ;;  %v300_v62 = vsel %vm290_vm0, %v287_v53, 0.0 }
 0x109   : > { %v288_v63 = vmul.f32 %v272_v54, %v264_v57 }
 0x10a   : > { %v299_v3 = vadd.f32 %v298_v56, %v297_v60  ;;  %v289_v7 = vmul.f32 %v273_v58, %v265_v61 }
 0x10b   : > { %v302_v10 = vsel %vm290_vm0, %v288_v63, 0.0 }
 0x10c   : > { %v301_v11 = vadd.f32 %v300_v62, %v299_v3  ;;  %v304_v16 = vsel %vm290_vm0, %v289_v7, 0.0 }
 0x10e   : > { %v303_v17 = vadd.f32 %v302_v10, %v301_v11 }
 0x110   : > { %v305_v22 = vadd.f32 %v304_v16, %v303_v17 }
 0x112   : > { %v306_v23 = vrot.slane %v305_v22, 4 }
 0x114   : > { %v307_v24 = vadd.f32 %v306_v23, %v305_v22 }
 0x116   : > { %v308_v25 = vrot.slane %v307_v24, 2 }
 0x118   : > { %v309_v26 = vadd.f32 %v308_v25, %v307_v24 }
 0x11a   : > { %v310_v27 = vrot.slane %v309_v26, 1 }
 0x11c   : > { %v311_v28 = vadd.f32 %v310_v27, %v309_v26 }
 0x11e   : > { %v312_v31 = vmax.f32 %v311_v28, 0.0 }
 0x120   : > { %v314_v34 = vmul.f32 %v312_v31, %v275_v29  ;;  %v313_v35 = vmul.f32 %v312_v31, %v274_v30  ;;  %v316_v38 = vmul.f32 %v312_v31, %v277_v32  ;;  %v315_v39 = vmul.f32 %v312_v31, %v276_v33 }
 0x121   : > { %v318_v44 = vmul.f32 %v312_v31, %v279_v40  ;;  %v317_v45 = vmul.f32 %v312_v31, %v278_v41  ;;  %v320_v50 = vmul.f32 %v312_v31, %v281_v46  ;;  %v319_v51 = vmul.f32 %v312_v31, %v280_v47 }
 0x122   : > { %v324_v36 = vsel %vm290_vm0, %v314_v34, 0.0  ;;  %v321_v37 = vsel %vm290_vm0, %v313_v35, 0.0  ;;  %v330_v42 = vsel %vm290_vm0, %v316_v38, 0.0  ;;  %v327_v43 = vsel %vm290_vm0, %v315_v39, 0.0 }
 0x123   : > { %325 = vadd.xlane.f32.xlu1 %v324_v36  ;;  %322 = vadd.xlane.f32.xlu0 %v321_v37  ;;  %v336_v48 = vsel %vm290_vm0, %v318_v44, 0.0  ;;  %v333_v49 = vsel %vm290_vm0, %v317_v45, 0.0  ;;  %v342_v52 = vsel %vm290_vm0, %v320_v50, 0.0  ;;  %v339_v53 = vsel %vm290_vm0, %v319_v51, 0.0 }
 0x127   : > { %331 = vadd.xlane.f32.xlu1 %v330_v42  ;;  %328 = vadd.xlane.f32.xlu0 %v327_v43 }
 0x12b   : > { %337 = vadd.xlane.f32.xlu1 %v336_v48  ;;  %334 = vadd.xlane.f32.xlu0 %v333_v49 }
 0x12f   : > { %343 = vadd.xlane.f32.xlu1 %v342_v52  ;;  %340 = vadd.xlane.f32.xlu0 %v339_v53 }
 0x1b0   : > { %v326_v54 = vpop.xlane.xlu1 %325  ;;  %v323_v55 = vpop.xlane.xlu0 %322 }
 0x1b1   : > { %v545_v56 = vmul.f32 -1.442695, %v326_v54  ;;  %v544_v57 = vmul.f32 -1.442695, %v323_v55 }
 0x1b3   : > { %632 = vpow2.f32 %v545_v56 }
 0x1b4   : > { %634 = vpow2.f32 %v544_v57  ;;  %v332_v58 = vpop.xlane.xlu1 %331  ;;  %v329_v59 = vpop.xlane.xlu0 %328 }
 0x1b5   : > { %v547_v60 = vmul.f32 -1.442695, %v332_v58  ;;  %v546_v61 = vmul.f32 -1.442695, %v329_v59 }
 0x1b7   : > { %636 = vpow2.f32 %v547_v60 }
 0x1b8   : > { %638 = vpow2.f32 %v546_v61  ;;  %v338_v62 = vpop.xlane.xlu1 %337  ;;  %v335_v63 = vpop.xlane.xlu0 %334 }
 0x1b9   : > { %v549_v3 = vmul.f32 -1.442695, %v338_v62  ;;  %v548_v7 = vmul.f32 -1.442695, %v335_v63 }
 0x1bb   : > { %640 = vpow2.f32 %v549_v3 }
 0x1bc   : > { %642 = vpow2.f32 %v548_v7  ;;  %v344_v10 = vpop.xlane.xlu1 %343  ;;  %v341_v11 = vpop.xlane.xlu0 %340 }
 0x1bd   : > { %v633_v16 = vpop.eup %632  ;;  %v551_v17 = vmul.f32 -1.442695, %v344_v10  ;;  %v550_v24 = vmul.f32 -1.442695, %v341_v11 }
 0x1be   : > { %v635_v22 = vpop.eup %634  ;;  %v370_v23 = vadd.f32 1.0, %v633_v16 }
 0x1bf   : > { %v369_v25 = vadd.f32 1.0, %v635_v22  ;;  %644 = vpow2.f32 %v551_v17 }
 0x1c0   : > { %646 = vrcp.f32 %v370_v23 }
 0x1c1   : > { %v637_v26 = vpop.eup %636  ;;  %648 = vrcp.f32 %v369_v25 }
 0x1c2   : > { %v639_v27 = vpop.eup %638  ;;  %v372_v28 = vadd.f32 1.0, %v637_v26  ;;  %650 = vpow2.f32 %v550_v24 }
 0x1c3   : > { %v371_v29 = vadd.f32 1.0, %v639_v27 }
 0x1c4   : > { %652 = vrcp.f32 %v372_v28 }
 0x1c5   : > { %v641_v30 = vpop.eup %640  ;;  %654 = vrcp.f32 %v371_v29 }
 0x1c6   : > { %v643_v31 = vpop.eup %642  ;;  %v374_v32 = vadd.f32 1.0, %v641_v30 }
 0x1c7   : > { %v373_v33 = vadd.f32 1.0, %v643_v31 }
 0x1c8   : > { %656 = vrcp.f32 %v374_v32 }
 0x1c9   : > { %v645_v34 = vpop.eup %644  ;;  %658 = vrcp.f32 %v373_v33 }
 0x1ca   : > { %v647_v35 = vpop.eup %646  ;;  %v376_v36 = vadd.f32 1.0, %v645_v34 }
 0x1cb   : > { %v649_v37 = vpop.eup %648  ;;  %v395_v38 = vmul.f32 %v647_v35, %v1048_v5  ;;  %v396_v39 = vmul.f32 %v647_v35, %v1050_v6 }
 0x1cc   : > { %v651_v40 = vpop.eup %650  ;;  %v393_v41 = vmul.f32 %v649_v37, %v1038_v0  ;;  %v394_v42 = vmul.f32 %v649_v37, %v1040_v1  ;;  %660 = vrcp.f32 %v376_v36 }
 0x1cd   : > { %411 = vst [vmem:[%s1108_s18 + $0x10] sm:$0xff] %v395_v38  ;;  %412 = vst [vmem:[%s1108_s18 + $0x18] sm:$0xff] %v396_v39  ;;  %v375_v5 = vadd.f32 1.0, %v651_v40 }
 0x1ce   : > { %v653_v6 = vpop.eup %652  ;;  %409 = vst [vmem:[%s1108_s18] sm:$0xff] %v393_v41  ;;  %410 = vst [vmem:[%s1108_s18 + $0x8] sm:$0xff] %v394_v42 }
 0x1cf   : > { %v655_v0 = vpop.eup %654  ;;  %v399_v1 = vmul.f32 %v653_v6, %v1054_v8  ;;  %v400_v43 = vmul.f32 %v653_v6, %v1056_v9  ;;  %662 = vrcp.f32 %v375_v5 }
 0x1d0   : > { %v397_v44 = vmul.f32 %v655_v0, %v1042_v2  ;;  %v398_v45 = vmul.f32 %v655_v0, %v1046_v4 }
 0x1d1   : > { %415 = vst [vmem:[%s1108_s18 + $0x30] sm:$0xff] %v399_v1  ;;  %416 = vst [vmem:[%s1108_s18 + $0x38] sm:$0xff] %v400_v43 }
 0x1d2   : > { %v657_v46 = vpop.eup %656  ;;  %413 = vst [vmem:[%s1108_s18 + $0x20] sm:$0xff] %v397_v44  ;;  %414 = vst [vmem:[%s1108_s18 + $0x28] sm:$0xff] %v398_v45 }
 0x1d3   : > { %v659_v47 = vpop.eup %658  ;;  %v403_v8 = vmul.f32 %v657_v46, %v1066_v14  ;;  %v404_v9 = vmul.f32 %v657_v46, %v1068_v15 }
 0x1d4   : > { %v401_v48 = vmul.f32 %v659_v47, %v1062_v12  ;;  %v402_v2 = vmul.f32 %v659_v47, %v1064_v13 }
 0x1d5   : > { %419 = vst [vmem:[%s1108_s18 + $0x50] sm:$0xff] %v403_v8  ;;  %420 = vst [vmem:[%s1108_s18 + $0x58] sm:$0xff] %v404_v9 }
 0x1d6   : > { %v661_v4 = vpop.eup %660  ;;  %417 = vst [vmem:[%s1108_s18 + $0x40] sm:$0xff] %v401_v48  ;;  %418 = vst [vmem:[%s1108_s18 + $0x48] sm:$0xff] %v402_v2 }
 0x1d7   : > { %v407_v49 = vmul.f32 %v661_v4, %v1078_v20  ;;  %v408_v14 = vmul.f32 %v661_v4, %v1080_v21 }
 0x1d9   : > { %v663_v15 = vpop.eup %662  ;;  %423 = vst [vmem:[%s1108_s18 + $0x70] sm:$0xff] %v407_v49  ;;  %424 = vst [vmem:[%s1108_s18 + $0x78] sm:$0xff] %v408_v14 }
 0x1da   : > { %v405_v12 = vmul.f32 %v663_v15, %v1074_v18  ;;  %v406_v13 = vmul.f32 %v663_v15, %v1076_v19 }
 0x1dc   : > { %421 = vst [vmem:[%s1108_s18 + $0x60] sm:$0xff] %v405_v12  ;;  %422 = vst [vmem:[%s1108_s18 + $0x68] sm:$0xff] %v406_v13 }
 0x1dd   : > { %763 = shalt.err (!%p760_p2)
}
 0x1de   : > { %s764_s25 = scalar_lea.hbm %s1139_s27, 2048  ;;  %s768_s21 = scalar_lea.hbm %s1192_s3, 4096 }
 0x1df   : > { %p765_p13 = scmp.ne.s32.totalorder %s1139_s27, %s764_s25  ;;  %p769_p4 = scmp.lt.u32.totalorder %s1139_s27, %s1192_s3 }
 0x1e0   : > { %p770_p5 = scmp.lt.u32.totalorder %s768_s21, %s764_s25  ;;  %p772_p11 = scmp.lt.u32.totalorder %s764_s25, %s1139_s27 }
 0x1e1   : > { %p766_p6 = pnand %p765_p13, %p1206_p0 }
 0x1e2   : > { %p771_p8 = por %p770_p5, %p769_p4 }
 0x1e3   : > { %p767_p10 = pneg %p766_p6 }
 0x1e4   : > { %p773_p1 = por %p772_p11, %p771_p8 }
 0x1e6   : > { %p774_p3 = pnand %p773_p1, %p767_p10 }
 0x1e8   : > { %777 = shalt.err (!%p774_p3)
}
 0x1e9   : > { %s830_s30 = smov 256   ;;  %s831_s18 = smov 16  }
 0x1ea   : > { %569 = dma.vmem_to_hbm [thread:$0]  (%p1206_p0), %s1141_s17, 2048, %s1139_s27, %s426_s16, %s830_s30, %s830_s30, %s831_s18  }
 0x1eb PF: > { %s454_s20 = sand.u32 1, %s808_s12   ;;  %p1207_p7 = scmp.ne.s32.totalorder %s1197_s19, 0 }
 0x1ec   : > { %p1208_p9 = scmp.ge.s32.totalorder %s820_s15, 2  ;;  %s455_s24 = scalar_lea.sflag [#allocation4], %s454_s20 }
 0x1ee   : > { %p583_p12 = pnand %p1208_p9, %p1207_p7 }
 0x1f0   : > { %803 = dma.done.wait (!%p583_p12), %s455_s24, 2048  }
 0x1f1   : > { %805 = vsyncadd (!%p583_p12), %s455_s24, 4294965248  ;;  %p17_p2 = scmp.ge.s32.totalorder %s962_s4, 4   ;;  %s1209_s12 = smov %s812_s13 }
 0x1f2   : > { %s1210_s13 = smov %s816_s14  ;;  %s1211_s14 = smov %s978_s9 }
 0x1f3   : > { %s1212_s15 = smov %s962_s4  ;;  %19 = sbr.rel (!%p17_p2) target bundleno = 6 (0x6), region = 85 }
 0x1fa   :  { %460 = vsyncpa [#allocation3], 1 }
 0x1fb   :  { %462 = vsyncpa [#allocation3 + $0x1], 1 }
 0x1fc   :  { %463 = vsyncpa [#allocation6], 1 }
 0x1fd   :  { %464 = vsyncpa [#allocation4], 1 }
 0x1fe   :  { %466 = vsyncpa [#allocation4 + $0x1], 1 }

</bundles_post_ra>
